<compile_context>
chip_gen: v5e
topology: v5e:2x2
jax: 0.10.0
libtpu: 0.0.40
codegen_flags: <defaults>
</compile_context>

<pallas_src>
import jax
import jax.numpy as jnp
import numpy as np
from jax import lax
from jax.experimental import pallas as pl
from jax.experimental.pallas import tpu as pltpu

ALPHA = 0.5
BETA = 0.5

# Combined (x + t) bytes per grid step; 2x double-buffering of both inputs
# stays well under the 32 MiB scoped-VMEM limit set below.
_TILE_BYTES = 8 * 1024 * 1024


def _ceil_div(a, b):
    return -(-a // b)


def _pick_unit(n):
    """Pick a (sublane, lane) slab whose size divides n (zero-copy reshape)."""
    for sub, lane in ((16, 512), (16, 256), (16, 128), (8, 128)):
        if n % (sub * lane) == 0:
            return sub, lane, False
    return 16, 512, True  # fallback: neutral zero-pad to a slab multiple


def _num_splits():
    """2 on chips with 2 schedulable TensorCores, else 1."""
    try:
        kind = jax.devices()[0].device_kind.lower()
    except Exception:
        return 1
    if any(tag in kind for tag in ("v5 lite", "v5e", "v6 lite", "v6e")):
        return 1
    return 2


def _make_kernel(n_slabs, g, bps, sub, lane):
    """Build the partial-sum kernel for a (g, sub, lane)-blocked flat tensor."""
    if sub == 16:
        fold = lambda a: a[:8, :] + a[8:, :]   # (16,lane) -> (8,lane)
    else:
        fold = lambda a: a                     # already (8,lane)

    def kernel(x_ref, t_ref, out_ref):
        # grid = (n_split "parallel", k_steps "arbitrary");
        # out_ref (3, 8, lane) is revisited across the whole k axis.
        s = pl.program_id(0)
        k = pl.program_id(1)

        @pl.when(k == 0)
        def _init():
            out_ref[...] = jnp.zeros_like(out_ref)

        # Logical start slab of this grid step; only `valid` slabs of the block
        # are real data (the block DMA may over-cover the ragged leading dim).
        start = (s * bps + k) * g
        valid = jnp.maximum(jnp.minimum(n_slabs - start, g), 0)

        def body(j, carry):
            su, st, sut = carry
            xs = x_ref[j].astype(jnp.float32)      # (sub, lane)
            ts = t_ref[j].astype(jnp.float32)
            # sigmoid(x) = 0.5*(tanh(x/2) + 1): a single EUP op per element;
            # accumulate in the u-domain, correct once in the epilogue.
            u = jnp.tanh(0.5 * xs)
            ut = u * ts
            return (su + fold(u), st + fold(ts), sut + fold(ut))

        zero = jnp.zeros((8, lane), jnp.float32)
        # Dynamic trip count (no unroll: unroll needs static bounds); each
        # iteration touches a full (sub, lane) slab so loop overhead is small.
        su, st, sut = lax.fori_loop(0, valid, body, (zero, zero, zero))

        out_ref[0] += su
        out_ref[1] += st
        out_ref[2] += sut

    return kernel


def tversky_loss(inputs, targets, smooth=1.0, alpha=ALPHA, beta=BETA,
                 tile_bytes=_TILE_BYTES):
    """Pallas implementation of TverskyLoss.forward(inputs, targets)."""
    n_true = int(np.prod(inputs.shape))
    sub, lane, need_pad = _pick_unit(n_true)
    slab = sub * lane

    flat_x = inputs.reshape(-1)   # free bitcast reshape
    flat_t = targets.reshape(-1)
    if need_pad:
        # Rare fallback (length not divisible by 1024). Zero padding is
        # neutral here: tanh(0) = 0 and t = 0 contribute nothing to any sum.
        pad = (-n_true) % slab
        flat_x = jnp.pad(flat_x, (0, pad))
        flat_t = jnp.pad(flat_t, (0, pad))

    n_slabs = flat_x.shape[0] // slab
    x3 = flat_x.reshape(n_slabs, sub, lane)   # free reshape (no copy)
    t3 = flat_t.reshape(n_slabs, sub, lane)

    bytes_per_slab = slab * (inputs.dtype.itemsize + targets.dtype.itemsize)
    g = max(1, min(int(tile_bytes) // bytes_per_slab, n_slabs))   # slabs/block
    blocks_total = _ceil_div(n_slabs, g)
    n_split = max(1, min(_num_splits(), blocks_total))
    bps = _ceil_div(blocks_total, n_split)    # blocks (k steps) per split
    k_steps = bps
    last_block = blocks_total - 1

    # Clamp so no grid step ever asks for a fully out-of-bounds block; the
    # in-kernel `valid` count already skips the compute for such steps.
    in_map = lambda s, k: (jnp.minimum(s * bps + k, last_block), 0, 0)
    out_map = lambda s, k: (s, 0, 0, 0)

    kernel = _make_kernel(n_slabs, g, bps, sub, lane)

    cost = pl.CostEstimate(
        flops=7 * n_slabs * slab,
        transcendentals=n_slabs * slab,
        bytes_accessed=n_slabs * bytes_per_slab + n_split * 3 * 8 * lane * 4,
    )

    partials = pl.pallas_call(
        kernel,
        out_shape=jax.ShapeDtypeStruct((n_split, 3, 8, lane), jnp.float32),
        grid_spec=pltpu.PrefetchScalarGridSpec(
            num_scalar_prefetch=0,
            grid=(n_split, k_steps),
            in_specs=[
                pl.BlockSpec((g, sub, lane), in_map),
                pl.BlockSpec((g, sub, lane), in_map),
            ],
            out_specs=pl.BlockSpec((None, 3, 8, lane), out_map),
        ),
        compiler_params=pltpu.CompilerParams(
            dimension_semantics=("parallel", "arbitrary"),
            vmem_limit_bytes=32 * 1024 * 1024,
        ),
        cost_estimate=cost,
    )(x3, t3)

    # Tiny epilogue over a few KiB of partials.
    su = jnp.sum(partials[:, 0])    # sum(tanh(x/2))
    st = jnp.sum(partials[:, 1])    # sum(t)
    sut = jnp.sum(partials[:, 2])   # sum(tanh(x/2) * t)

    sum_p = 0.5 * (su + jnp.float32(n_true))   # sum(sigmoid(x))
    tp = 0.5 * (sut + st)                      # sum(p * t)
    fp = sum_p - tp                            # sum((1 - t) * p)
    fn = st - tp                               # sum(t * (1 - p))
    tversky = (tp + smooth) / (tp + alpha * fp + beta * fn + smooth)
    return 1.0 - tversky


def tversky_loss_ref(inputs, targets, smooth=1.0, alpha=ALPHA, beta=BETA):
    """Pure-JAX reference mirroring the PyTorch forward exactly."""
    p = jax.nn.sigmoid(inputs.astype(jnp.float32)).reshape(-1)
    t = targets.astype(jnp.float32).reshape(-1)
    tp = jnp.sum(p * t)
    fp = jnp.sum((1.0 - t) * p)
    fn = jnp.sum(t * (1.0 - p))
    tversky = (tp + smooth) / (tp + alpha * fp + beta * fn + smooth)
    return 1.0 - tversky


if __name__ == "__main__":
    key = jax.random.PRNGKey(0)
    k1, k2, k3, k4, k5, k6 = jax.random.split(key, 6)

    # 1) Primary: small segmentation-head shape, zero-copy fast path.
    B, C, H, W = 2, 4, 32, 32
    logits = jax.random.normal(k1, (B, C, H, W), jnp.float32).astype(jnp.bfloat16)
    masks = (jax.random.uniform(k2, (B, C, H, W)) > 0.5).astype(jnp.bfloat16)
    loss = jax.block_until_ready(tversky_loss(logits, masks))
    ref = jax.block_until_ready(tversky_loss_ref(logits, masks))
    np.testing.assert_allclose(np.asarray(loss), np.asarray(ref), rtol=5e-5, atol=5e-5)

    # 2) Multi-block case (small tile forces several accumulation grid steps).
    x2 = jax.random.normal(k3, (2, 4, 64, 64), jnp.float32).astype(jnp.bfloat16)
    t2 = (jax.random.uniform(k4, (2, 4, 64, 64)) > 0.5).astype(jnp.bfloat16)
    loss2 = jax.block_until_ready(tversky_loss(x2, t2, tile_bytes=32 * 1024))
    ref2 = jax.block_until_ready(tversky_loss_ref(x2, t2))
    np.testing.assert_allclose(np.asarray(loss2), np.asarray(ref2), rtol=5e-5, atol=5e-5)

    # 3) Awkward (non-multiple-of-1024) size: exercises the padded fallback.
    x3 = jax.random.normal(k5, (2, 3, 17, 19), jnp.float32)
    t3 = (jax.random.uniform(k6, (2, 3, 17, 19)) > 0.5).astype(jnp.float32)
    loss3 = jax.block_until_ready(tversky_loss(x3, t3))
    ref3 = jax.block_until_ready(tversky_loss_ref(x3, t3))
    np.testing.assert_allclose(np.asarray(loss3), np.asarray(ref3), rtol=5e-5, atol=5e-5)

    print("KERNEL_OK")
</pallas_src>

<mosaic_0001>
module attributes {stable_mosaic.version = 11 : i64} {
  func.func @kernel(%arg0: i32, %arg1: i32, %arg2: memref<1x16x512xbf16, #tpu.memory_space<vmem>>, %arg3: memref<1x16x512xbf16, #tpu.memory_space<vmem>>, %arg4: memref<1x3x8x512xf32, #tpu.memory_space<vmem>>) attributes {dimension_semantics = [#tpu.dimension_semantics<parallel>, #tpu.dimension_semantics<arbitrary>], iteration_bounds = array<i64: 1, 1>, scalar_prefetch = 0 : i64, scratch_operands = 0 : i64, tpu.core_type = #tpu.core_type<tc>, window_params = [{transform_indices = @transform_0, window_bounds = array<i64: 1, 16, 512>}, {transform_indices = @transform_1, window_bounds = array<i64: 1, 16, 512>}, {transform_indices = @transform_2, window_bounds = array<i64: 1, 3, 8, 512>}]} {
    %c0_i32 = arith.constant 0 : i32
    %0 = arith.cmpi eq, %arg1, %c0_i32 : i32
    %1 = arith.extui %0 : i1 to i32
    %c0_i32_0 = arith.constant 0 : i32
    %2 = arith.cmpi ne, %1, %c0_i32_0 : i32
    scf.if %2 {
      %cst_28 = arith.constant 0.000000e+00 : f32
      %31 = vector.broadcast %cst_28 : f32 to vector<3x8x512xf32>
      %c0_29 = arith.constant 0 : index
      %c0_30 = arith.constant 0 : index
      %c0_31 = arith.constant 0 : index
      %c0_32 = arith.constant 0 : index
      %32 = vector.load %arg4[%c0_29, %c0_30, %c0_31, %c0_32] : memref<1x3x8x512xf32, #tpu.memory_space<vmem>>, vector<1x3x8x512xf32>
      %33 = vector.shape_cast %32 : vector<1x3x8x512xf32> to vector<3x8x512xf32>
      %34 = vector.shape_cast %31 : vector<3x8x512xf32> to vector<1x3x8x512xf32>
      tpu.vector_store %arg4[%c0_29, %c0_30, %c0_31, %c0_32], %34 {strides = array<i32>} : memref<1x3x8x512xf32, #tpu.memory_space<vmem>>, vector<1x3x8x512xf32>,
    } else {
    }
    %c1_i32 = arith.constant 1 : i32
    %3 = arith.muli %arg0, %c1_i32 : i32
    %4 = arith.addi %3, %arg1 : i32
    %c1_i32_1 = arith.constant 1 : i32
    %5 = arith.muli %4, %c1_i32_1 : i32
    %c1_i32_2 = arith.constant 1 : i32
    %6 = arith.subi %c1_i32_2, %5 : i32
    %c1_i32_3 = arith.constant 1 : i32
    %7 = arith.minsi %6, %c1_i32_3 : i32
    %c0_i32_4 = arith.constant 0 : i32
    %8 = arith.maxsi %7, %c0_i32_4 : i32
    %cst = arith.constant 0.000000e+00 : f32
    %9 = vector.broadcast %cst : f32 to vector<8x512xf32>
    %c0_i32_5 = arith.constant 0 : i32
    %10 = arith.subi %8, %c0_i32_5 : i32
    %11 = arith.addi %c0_i32_5, %10 : i32
    %c1_i32_6 = arith.constant 1 : i32
    %12:3 = scf.for %arg5 = %c0_i32_5 to %11 step %c1_i32_6 iter_args(%arg6 = %9, %arg7 = %9, %arg8 = %9) -> (vector<8x512xf32>, vector<8x512xf32>, vector<8x512xf32>)  : i32 {
      %31 = arith.index_cast %arg5 : i32 to index
      %c0_28 = arith.constant 0 : index
      %c0_29 = arith.constant 0 : index
      %32 = vector.load %arg2[%31, %c0_28, %c0_29] : memref<1x16x512xbf16, #tpu.memory_space<vmem>>, vector<1x16x512xbf16>
      %33 = vector.shape_cast %32 : vector<1x16x512xbf16> to vector<16x512xbf16>
      %34 = arith.extf %33 : vector<16x512xbf16> to vector<16x512xf32>
      %35 = arith.index_cast %arg5 : i32 to index
      %c0_30 = arith.constant 0 : index
      %c0_31 = arith.constant 0 : index
      %36 = vector.load %arg3[%35, %c0_30, %c0_31] : memref<1x16x512xbf16, #tpu.memory_space<vmem>>, vector<1x16x512xbf16>
      %37 = vector.shape_cast %36 : vector<1x16x512xbf16> to vector<16x512xbf16>
      %38 = arith.extf %37 : vector<16x512xbf16> to vector<16x512xf32>
      %cst_32 = arith.constant 5.000000e-01 : f32
      %39 = vector.broadcast %cst_32 : f32 to vector<16x512xf32>
      %40 = arith.mulf %39, %34 : vector<16x512xf32>
      %41 = math.tanh %40 : vector<16x512xf32>
      %42 = arith.mulf %41, %38 : vector<16x512xf32>
      %43 = vector.extract_strided_slice %41 {offsets = [0, 0], sizes = [8, 512], strides = [1, 1]} : vector<16x512xf32> to vector<8x512xf32>
      %44 = vector.extract_strided_slice %41 {offsets = [8, 0], sizes = [8, 512], strides = [1, 1]} : vector<16x512xf32> to vector<8x512xf32>
      %45 = arith.addf %43, %44 : vector<8x512xf32>
      %46 = arith.addf %arg6, %45 : vector<8x512xf32>
      %47 = vector.extract_strided_slice %38 {offsets = [0, 0], sizes = [8, 512], strides = [1, 1]} : vector<16x512xf32> to vector<8x512xf32>
      %48 = vector.extract_strided_slice %38 {offsets = [8, 0], sizes = [8, 512], strides = [1, 1]} : vector<16x512xf32> to vector<8x512xf32>
      %49 = arith.addf %47, %48 : vector<8x512xf32>
      %50 = arith.addf %arg7, %49 : vector<8x512xf32>
      %51 = vector.extract_strided_slice %42 {offsets = [0, 0], sizes = [8, 512], strides = [1, 1]} : vector<16x512xf32> to vector<8x512xf32>
      %52 = vector.extract_strided_slice %42 {offsets = [8, 0], sizes = [8, 512], strides = [1, 1]} : vector<16x512xf32> to vector<8x512xf32>
      %53 = arith.addf %51, %52 : vector<8x512xf32>
      %54 = arith.addf %arg8, %53 : vector<8x512xf32>
      scf.yield %46, %50, %54 : vector<8x512xf32>, vector<8x512xf32>, vector<8x512xf32>
    }
    %c0 = arith.constant 0 : index
    %c0_7 = arith.constant 0 : index
    %c0_8 = arith.constant 0 : index
    %c0_9 = arith.constant 0 : index
    %13 = vector.load %arg4[%c0, %c0_7, %c0_8, %c0_9] : memref<1x3x8x512xf32, #tpu.memory_space<vmem>>, vector<1x1x8x512xf32>
    %14 = vector.shape_cast %13 : vector<1x1x8x512xf32> to vector<8x512xf32>
    %15 = arith.addf %14, %12#0 : vector<8x512xf32>
    %c0_10 = arith.constant 0 : index
    %c0_11 = arith.constant 0 : index
    %c0_12 = arith.constant 0 : index
    %c0_13 = arith.constant 0 : index
    %16 = vector.load %arg4[%c0_10, %c0_11, %c0_12, %c0_13] : memref<1x3x8x512xf32, #tpu.memory_space<vmem>>, vector<1x1x8x512xf32>
    %17 = vector.shape_cast %16 : vector<1x1x8x512xf32> to vector<8x512xf32>
    %18 = vector.shape_cast %15 : vector<8x512xf32> to vector<1x1x8x512xf32>
    tpu.vector_store %arg4[%c0_10, %c0_11, %c0_12, %c0_13], %18 {strides = array<i32>} : memref<1x3x8x512xf32, #tpu.memory_space<vmem>>, vector<1x1x8x512xf32>,
    %c0_14 = arith.constant 0 : index
    %c1 = arith.constant 1 : index
    %c0_15 = arith.constant 0 : index
    %c0_16 = arith.constant 0 : index
    %19 = vector.load %arg4[%c0_14, %c1, %c0_15, %c0_16] : memref<1x3x8x512xf32, #tpu.memory_space<vmem>>, vector<1x1x8x512xf32>
    %20 = vector.shape_cast %19 : vector<1x1x8x512xf32> to vector<8x512xf32>
    %21 = arith.addf %20, %12#1 : vector<8x512xf32>
    %c0_17 = arith.constant 0 : index
    %c1_18 = arith.constant 1 : index
    %c0_19 = arith.constant 0 : index
    %c0_20 = arith.constant 0 : index
    %22 = vector.load %arg4[%c0_17, %c1_18, %c0_19, %c0_20] : memref<1x3x8x512xf32, #tpu.memory_space<vmem>>, vector<1x1x8x512xf32>
    %23 = vector.shape_cast %22 : vector<1x1x8x512xf32> to vector<8x512xf32>
    %24 = vector.shape_cast %21 : vector<8x512xf32> to vector<1x1x8x512xf32>
    tpu.vector_store %arg4[%c0_17, %c1_18, %c0_19, %c0_20], %24 {strides = array<i32>} : memref<1x3x8x512xf32, #tpu.memory_space<vmem>>, vector<1x1x8x512xf32>,
    %c0_21 = arith.constant 0 : index
    %c2 = arith.constant 2 : index
    %c0_22 = arith.constant 0 : index
    %c0_23 = arith.constant 0 : index
    %25 = vector.load %arg4[%c0_21, %c2, %c0_22, %c0_23] : memref<1x3x8x512xf32, #tpu.memory_space<vmem>>, vector<1x1x8x512xf32>
    %26 = vector.shape_cast %25 : vector<1x1x8x512xf32> to vector<8x512xf32>
    %27 = arith.addf %26, %12#2 : vector<8x512xf32>
    %c0_24 = arith.constant 0 : index
    %c2_25 = arith.constant 2 : index
    %c0_26 = arith.constant 0 : index
    %c0_27 = arith.constant 0 : index
    %28 = vector.load %arg4[%c0_24, %c2_25, %c0_26, %c0_27] : memref<1x3x8x512xf32, #tpu.memory_space<vmem>>, vector<1x1x8x512xf32>
    %29 = vector.shape_cast %28 : vector<1x1x8x512xf32> to vector<8x512xf32>
    %30 = vector.shape_cast %27 : vector<8x512xf32> to vector<1x1x8x512xf32>
    tpu.vector_store %arg4[%c0_24, %c2_25, %c0_26, %c0_27], %30 {strides = array<i32>} : memref<1x3x8x512xf32, #tpu.memory_space<vmem>>, vector<1x1x8x512xf32>,
    return
  }
  func.func @transform_0(%arg0: i32, %arg1: i32) -> (i32, i32, i32) {
    %c1_i32 = arith.constant 1 : i32
    %0 = arith.muli %arg0, %c1_i32 : i32
    %1 = arith.addi %0, %arg1 : i32
    %c0_i32 = arith.constant 0 : i32
    %2 = arith.minsi %1, %c0_i32 : i32
    %c0_i32_0 = arith.constant 0 : i32
    %c0_i32_1 = arith.constant 0 : i32
    %c0_i32_2 = arith.constant 0 : i32
    return %2, %c0_i32_0, %c0_i32_1 : i32, i32, i32
  }
  func.func @transform_1(%arg0: i32, %arg1: i32) -> (i32, i32, i32) {
    %c1_i32 = arith.constant 1 : i32
    %0 = arith.muli %arg0, %c1_i32 : i32
    %1 = arith.addi %0, %arg1 : i32
    %c0_i32 = arith.constant 0 : i32
    %2 = arith.minsi %1, %c0_i32 : i32
    %c0_i32_0 = arith.constant 0 : i32
    %c0_i32_1 = arith.constant 0 : i32
    %c0_i32_2 = arith.constant 0 : i32
    return %2, %c0_i32_0, %c0_i32_1 : i32, i32, i32
  }
  func.func @transform_2(%arg0: i32, %arg1: i32) -> (i32, i32, i32, i32) {
    %c0_i32 = arith.constant 0 : i32
    %c0_i32_0 = arith.constant 0 : i32
    %c0_i32_1 = arith.constant 0 : i32
    %c0_i32_2 = arith.constant 0 : i32
    return %arg0, %c0_i32, %c0_i32_0, %c0_i32_1 : i32, i32, i32, i32
  }
}

</mosaic_0001>

<bundles_post_ra>
// kernel: tpu_custom_call.1
= control target key start
LH: loop header
LB: loop body
LE: loop exit
PB: predicated region body
PF: predicated region fallthrough
CT: control target
= control target key end

     0   :  { %7 = vsyncpa [#allocation3], 0  ;;  %s748_s0 = inlined_call_operand.hbm [shape: bf16[1,16,512], index: 0, kind: input, shape index: {}]   ;;  %s749_s1 = inlined_call_operand.hbm [shape: bf16[1,16,512], index: 1, kind: input, shape index: {}]   ;;  %s750_s2 = inlined_call_operand.hbm [shape: f32[1,3,8,512], index: 2, kind: output, shape index: {}]  }
   0x1   :  { %8 = vsyncpa [#allocation6], 0 }
   0x2   :  { %9 = vsyncpa [#allocation4], 0  ;;  %s20_s11 = sshll.u32 %s748_s0, 4  ;;  %s601_s12 = smov [#allocation2]   ;;  %s21_s11 = int_to_ptr.hbm [resolvable:$true] %s20_s11 }
   0x3   :  { %s22_s13 = sshll.u32 %s601_s12, 4  ;;  %s39_s16 = sshll.u32 %s749_s1, 4  ;;  %s23_s13 = int_to_ptr.vmem [resolvable:$true] %s22_s13  ;;  %s40_s16 = int_to_ptr.hbm [resolvable:$true] %s39_s16 }
   0x4   :  { %s602_s17 = smov 256   ;;  %s603_s18 = smov 16  }
   0x5   :  { %28 = dma.hbm_to_vmem [thread:$0]  %s21_s11, 512, %s23_s13, [#allocation3], %s602_s17, %s602_s17, %s603_s18  }
   0x6   :  { %s604_s19 = smov [#allocation5]  }
   0x7   :  { %s41_s20 = sshll.u32 %s604_s19, 4  ;;  %s42_s20 = int_to_ptr.vmem [resolvable:$true] %s41_s20 }
   0x8   :  { %47 = dma.hbm_to_vmem [thread:$0]  %s40_s16, 512, %s42_s20, [#allocation6], %s602_s17, %s602_s17, %s603_s18  }
   0x9   :  { %543 = dma.done.wait [#allocation3], 512  }
   0xa   :  { %544 = vsyncadd [#allocation3], 4294966784 }
   0xb   :  { %545 = dma.done.wait [#allocation6], 512  }
   0xc   :  { %546 = vsyncadd [#allocation6], 4294966784  ;;  %v605_v0 = vmov 0.0   ;;  %v630_v1 = vmov 0.0   ;;  %v632_v2 = vmov 0.0   ;;  %v634_v3 = vmov 0.0  }
   0xd   :  { %66 = vst [vmem:[#allocation7] sm:$0xff] %v605_v0  ;;  %v636_v4 = vmov 0.0   ;;  %v638_v5 = vmov 0.0   ;;  %v640_v6 = vmov 0.0   ;;  %v642_v7 = vmov 0.0   ;;  %s654_s0 = smov 0  }
   0xe   :  { %67 = vst [vmem:[#allocation7 + $0x8] sm:$0xff] %v605_v0  ;;  %v644_v8 = vmov 0.0   ;;  %v646_v9 = vmov 0.0   ;;  %v648_v10 = vmov 0.0   ;;  %v650_v11 = vmov 0.0  }
   0xf   :  { %68 = vst [vmem:[#allocation7 + $0x10] sm:$0xff] %v605_v0  ;;  %v652_v12 = vmov 0.0  }
  0x10   :  { %69 = vst [vmem:[#allocation7 + $0x18] sm:$0xff] %v605_v0 }
  0x11   :  { %70 = vst [vmem:[#allocation7 + $0x20] sm:$0xff] %v605_v0 }
  0x12   :  { %71 = vst [vmem:[#allocation7 + $0x28] sm:$0xff] %v605_v0 }
  0x13   :  { %72 = vst [vmem:[#allocation7 + $0x30] sm:$0xff] %v605_v0 }
  0x14   :  { %73 = vst [vmem:[#allocation7 + $0x38] sm:$0xff] %v605_v0 }
  0x15   :  { %74 = vst [vmem:[#allocation7 + $0x40] sm:$0xff] %v605_v0 }
  0x16   :  { %75 = vst [vmem:[#allocation7 + $0x48] sm:$0xff] %v605_v0 }
  0x17   :  { %76 = vst [vmem:[#allocation7 + $0x50] sm:$0xff] %v605_v0 }
  0x18   :  { %77 = vst [vmem:[#allocation7 + $0x58] sm:$0xff] %v605_v0 }
  0x19 LB: > { %s289_s1 = sshll.u32 %s599_s0, 5  ;;  %s87_s0 = sadd.s32 1, %s599_s0   ;;  %s599_s0 = sphi %s654_s0, %s87_s0   ;;  %v595_v12 = vphi %v652_v12, %v767_v12   ;;  %v591_v11 = vphi %v650_v11, %v766_v11   ;;  %v587_v10 = vphi %v648_v10, %v765_v10   ;;  %v583_v9 = vphi %v646_v9, %v764_v9   ;;  %v579_v8 = vphi %v644_v8, %v763_v8   ;;  %v575_v7 = vphi %v642_v7, %v762_v7   ;;  %v571_v6 = vphi %v640_v6, %v761_v6   ;;  %v567_v5 = vphi %v638_v5, %v760_v5   ;;  %v563_v4 = vphi %v636_v4, %v759_v4   ;;  %v559_v3 = vphi %v634_v3, %v758_v3   ;;  %v555_v2 = vphi %v632_v2, %v757_v2   ;;  %v551_v1 = vphi %v630_v1, %v756_v1  }
  0x1a   : > { %s104_s21 = scalar_lea.vmem [#allocation2], %s289_s1  ;;  %s118_s22 = scalar_lea.vmem [#allocation5], %s289_s1 }
  0x1b   : > { %v105_v13 = vld [vmem:[%s104_s21] sm:$0xff]  ;;  %v106_v14 = vld [vmem:[%s104_s21 + $0x8] sm:$0xff]  ;;  %v107_v15 = vld [vmem:[%s104_s21 + $0x10] sm:$0xff]  ;;  %p705_p0 = scmp.ge.s32.totalorder %s87_s0, 1 }
  0x1c   : > { %v108_v16 = vld [vmem:[%s104_s21 + $0x18] sm:$0xff]  ;;  %v119_v17 = vld [vmem:[%s118_s22] sm:$0xff]  ;;  %v109_v18 = vunpack.c.l.bf16 %v105_v13  ;;  %v110_v19 = vunpack.c.h.bf16 %v105_v13  ;;  %v111_v20 = vunpack.c.l.bf16 %v106_v14  ;;  %v120_v21 = vld [vmem:[%s118_s22 + $0x8] sm:$0xff]  ;;  %v112_v23 = vunpack.c.h.bf16 %v106_v14  ;;  %s606_s24 = smov (%p705_p0), [#allocation7]   ;;  %s223_s28 = sshll.u32 (%p705_p0), %s750_s2, 4  ;;  %s224_s28 = int_to_ptr.hbm [resolvable:$true] %s223_s28 }
  0x1d   : > { %v121_v22 = vld [vmem:[%s118_s22 + $0x10] sm:$0xff]  ;;  %v113_v24 = vunpack.c.l.bf16 %v107_v15  ;;  %v122_v25 = vld [vmem:[%s118_s22 + $0x18] sm:$0xff]  ;;  %v114_v26 = vunpack.c.h.bf16 %v107_v15  ;;  %v115_v27 = vunpack.c.l.bf16 %v108_v16  ;;  %v116_v28 = vunpack.c.h.bf16 %v108_v16  ;;  %s221_s25 = sshll.u32 (%p705_p0), %s606_s24, 4  ;;  %s607_s29 = smov (%p705_p0), 512   ;;  %s222_s25 = int_to_ptr.vmem [resolvable:$true] %s221_s25 }
  0x1e   : > { %v123_v29 = vunpack.c.l.bf16 %v119_v17  ;;  %v124_v30 = vunpack.c.h.bf16 %v119_v17  ;;  %v125_v31 = vunpack.c.l.bf16 %v120_v21  ;;  %v127_v32 = vunpack.c.l.bf16 %v121_v22  ;;  %s608_s30 = smov (%p705_p0), 32  }
  0x1f   : > { %v128_v33 = vunpack.c.h.bf16 %v121_v22  ;;  %v129_v34 = vunpack.c.l.bf16 %v122_v25  ;;  %v131_v35 = vmul.f32 0.5, %v109_v18  ;;  %v132_v36 = vmul.f32 0.5, %v110_v19 }
  0x20   : > { %v133_v37 = vmul.f32 0.5, %v111_v20  ;;  %v126_v38 = vunpack.c.h.bf16 %v120_v21  ;;  %v130_v39 = vunpack.c.h.bf16 %v122_v25  ;;  %v134_v40 = vmul.f32 0.5, %v112_v23 }
  0x21   : > { %v135_v41 = vmul.f32 0.5, %v113_v24  ;;  %403 = vtanh.f32 %v131_v35  ;;  %v163_v42 = vadd.f32 %v127_v32, %v123_v29  ;;  %v164_v43 = vadd.f32 %v128_v33, %v124_v30  ;;  %v192_v35 = vld [vmem:[#allocation7 + $0x20] sm:$0xff] (%p705_p0) }
  0x22   : > { %v165_v44 = vadd.f32 %v129_v34, %v125_v31  ;;  %v136_v45 = vmul.f32 0.5, %v114_v26  ;;  %v137_v46 = vmul.f32 0.5, %v115_v27  ;;  %405 = vtanh.f32 %v132_v36  ;;  %v193_v36 = vld [vmem:[#allocation7 + $0x28] sm:$0xff] (%p705_p0) }
  0x23   : > { %v166_v47 = vadd.f32 %v130_v39, %v126_v38  ;;  %407 = vtanh.f32 %v133_v37  ;;  %v688_v8 = vadd.f32 %v579_v8, %v163_v42   ;;  %v690_v7 = vadd.f32 %v575_v7, %v164_v43   ;;  %v205_v42 = vld [vmem:[#allocation7 + $0x40] sm:$0xff] (%p705_p0) }
  0x24   : > { %v692_v6 = vadd.f32 %v571_v6, %v165_v44   ;;  %v138_v51 = vmul.f32 0.5, %v116_v28  ;;  %409 = vtanh.f32 %v134_v40  ;;  %v195_v40 = vld [vmem:[#allocation7 + $0x38] sm:$0xff] (%p705_p0) }
  0x25   : > { %v751_v48 = vmov %v688_v8  ;;  %v752_v49 = vmov %v690_v7  ;;  %v694_v5 = vadd.f32 %v567_v5, %v166_v47   ;;  %411 = vtanh.f32 %v135_v41 }
  0x26   : > { %v753_v50 = vmov %v692_v6  ;;  %413 = vtanh.f32 %v136_v45  ;;  %v197_v41 = vadd.f32 (%p705_p0), %v193_v36, %v752_v49 }
  0x27   : > { %v754_v52 = vmov %v694_v5  ;;  %v404_v53 = vpop.eup %403  ;;  %415 = vtanh.f32 %v137_v46 }
  0x28   : > { %v406_v54 = vpop.eup %405  ;;  %417 = vtanh.f32 %v138_v51  ;;  %v147_v57 = vmul.f32 %v404_v53, %v123_v29  ;;  %v180_v29 = vld [vmem:[#allocation7 + $0x8] sm:$0xff] (%p705_p0)  ;;  %201 = vst [vmem:[#allocation7 + $0x28] sm:$0xff] (%p705_p0), %v197_v41 }
  0x29   : > { %v408_v55 = vpop.eup %407  ;;  %v148_v59 = vmul.f32 %v406_v54, %v124_v30  ;;  %v181_v30 = vld [vmem:[#allocation7 + $0x10] sm:$0xff] (%p705_p0) }
  0x2a   : > { %v410_v56 = vpop.eup %409  ;;  %v149_v61 = vmul.f32 %v408_v55, %v125_v31 }
  0x2b   : > { %v412_v58 = vpop.eup %411  ;;  %v150_v6 = vmul.f32 %v410_v56, %v126_v38  ;;  %v194_v38 = vld [vmem:[#allocation7 + $0x30] sm:$0xff] (%p705_p0) }
  0x2c   : > { %v414_v60 = vpop.eup %413  ;;  %v151_v62 = vmul.f32 %v412_v58, %v127_v32  ;;  %v155_v63 = vadd.f32 %v412_v58, %v404_v53 }
  0x2d   : > { %v416_v0 = vpop.eup %415  ;;  %v152_v7 = vmul.f32 %v414_v60, %v128_v33  ;;  %v156_v8 = vadd.f32 %v414_v60, %v406_v54 }
  0x2e   : > { %v418_v5 = vpop.eup %417  ;;  %v153_v13 = vmul.f32 %v416_v0, %v129_v34  ;;  %v157_v14 = vadd.f32 %v416_v0, %v408_v55  ;;  %v159_v15 = vadd.f32 %v595_v12, %v155_v63   ;;  %v171_v16 = vadd.f32 %v151_v62, %v147_v57  ;;  %v182_v34 = vld [vmem:[#allocation7 + $0x18] sm:$0xff] (%p705_p0) }
  0x2f   : > { %v154_v17 = vmul.f32 %v418_v5, %v130_v39  ;;  %v158_v18 = vadd.f32 %v418_v5, %v410_v56  ;;  %v160_v19 = vadd.f32 %v591_v11, %v156_v8   ;;  %v172_v20 = vadd.f32 %v152_v7, %v148_v59 }
  0x30   : > { %v161_v21 = vadd.f32 %v587_v10, %v157_v14   ;;  %v173_v22 = vadd.f32 %v153_v13, %v149_v61  ;;  %v175_v23 = vadd.f32 %v563_v4, %v171_v16   ;;  %v760_v5 = vmov %v754_v52 }
  0x31   : > { %v162_v24 = vadd.f32 %v583_v9, %v158_v18   ;;  %v174_v25 = vadd.f32 %v154_v17, %v150_v6  ;;  %v176_v26 = vadd.f32 %v559_v3, %v172_v20   ;;  %v761_v6 = vmov %v753_v50  ;;  %89 = sbr.rel (!%p705_p0) target bundleno = 25 (0x19), region = 53 }
  0x32   : > { %v177_v27 = vadd.f32 %v555_v2, %v173_v22   ;;  %v759_v4 = vmov %v175_v23  ;;  %v762_v7 = vmov %v752_v49  ;;  %v763_v8 = vmov %v751_v48 }
  0x33   : > { %v178_v28 = vadd.f32 %v551_v1, %v174_v25   ;;  %v758_v3 = vmov %v176_v26  ;;  %v764_v9 = vmov %v162_v24  ;;  %v765_v10 = vmov %v161_v21  ;;  %v207_v4 = vld [vmem:[#allocation7 + $0x50] sm:$0xff] (%p705_p0) }
  0x34   : > { %v757_v2 = vmov %v177_v27  ;;  %v766_v11 = vmov %v160_v19  ;;  %v767_v12 = vmov %v159_v15  ;;  %v184_v32 = vadd.f32 (%p705_p0), %v180_v29, %v160_v19  ;;  %v208_v10 = vld [vmem:[#allocation7 + $0x58] sm:$0xff] (%p705_p0) }
  0x35   : > { %v756_v1 = vmov %v178_v28  ;;  %v179_v12 = vld [vmem:[#allocation7] sm:$0xff] (%p705_p0)  ;;  %v185_v33 = vadd.f32 (%p705_p0), %v181_v30, %v161_v21  ;;  %v186_v37 = vadd.f32 (%p705_p0), %v182_v34, %v162_v24  ;;  %v196_v39 = vadd.f32 (%p705_p0), %v192_v35, %v751_v48  ;;  %v206_v2 = vld [vmem:[#allocation7 + $0x48] sm:$0xff] (%p705_p0) }
  0x36   :  { %v183_v31 = vadd.f32 %v179_v12, %v159_v15  ;;  %188 = vst [vmem:[#allocation7 + $0x8] sm:$0xff] %v184_v32  ;;  %v198_v1 = vadd.f32 %v194_v38, %v753_v50  ;;  %v199_v3 = vadd.f32 %v195_v40, %v754_v52  ;;  %v209_v9 = vadd.f32 %v205_v42, %v175_v23 }
  0x37   :  { %189 = vst [vmem:[#allocation7 + $0x10] sm:$0xff] %v185_v33  ;;  %v210_v11 = vadd.f32 %v206_v2, %v176_v26  ;;  %v211_v43 = vadd.f32 %v207_v4, %v177_v27  ;;  %v212_v44 = vadd.f32 %v208_v10, %v178_v28 }
  0x38   :  { %187 = vst [vmem:[#allocation7] sm:$0xff] %v183_v31 }
  0x39   :  { %190 = vst [vmem:[#allocation7 + $0x18] sm:$0xff] %v186_v37 }
  0x3a   :  { %200 = vst [vmem:[#allocation7 + $0x20] sm:$0xff] %v196_v39 }
  0x3b   :  { %202 = vst [vmem:[#allocation7 + $0x30] sm:$0xff] %v198_v1 }
  0x3c   :  { %203 = vst [vmem:[#allocation7 + $0x38] sm:$0xff] %v199_v3 }
  0x3d   :  { %213 = vst [vmem:[#allocation7 + $0x40] sm:$0xff] %v209_v9 }
  0x3e   :  { %214 = vst [vmem:[#allocation7 + $0x48] sm:$0xff] %v210_v11 }
  0x3f   :  { %215 = vst [vmem:[#allocation7 + $0x50] sm:$0xff] %v211_v43 }
  0x40   :  { %216 = vst [vmem:[#allocation7 + $0x58] sm:$0xff] %v212_v44 }
  0x41   :  { %229 = dma.vmem_to_hbm [thread:$0]  %s222_s25, 1536, %s224_s28, [#allocation4], %s607_s29, %s607_s29, %s608_s30  }
  0x42   :  { %547 = dma.done.wait [#allocation4], 1536  }
  0x43   :  { %548 = vsyncadd [#allocation4], 4294965760 }
  0x44   :  { %234 = vsyncpa [#allocation3], 1 }
  0x45   :  { %235 = vsyncpa [#allocation6], 1 }
  0x46   :  { %236 = vsyncpa [#allocation4], 1 }

</bundles_post_ra>
